<compile_context>
chip_gen: v5e
topology: v5e:2x2
jax: 0.10.0
libtpu: 0.0.40
codegen_flags: <defaults>
</compile_context>

<pallas_src>
import jax
import jax.numpy as jnp
from jax.experimental import pallas as pl
from jax.experimental.pallas import tpu as pltpu

LN_EPS = 1e-6  # TRAR's custom LayerNorm uses eps=1e-6


def _round_up(x, m):
    return ((x + m - 1) // m) * m


def _cls_kernel(lang_ref, img_ref, w_ref, b_ref, o_ref):
    # Upcast to f32 inside the kernel; inputs DMA'd in their native dtype.
    x = lang_ref[...].astype(jnp.float32) + img_ref[...].astype(jnp.float32)  # (tm, D)

    # Fused LayerNorm statistics (single pass over the tile).
    mean = jnp.mean(x, axis=-1, keepdims=True)              # (tm, 1)
    mean_sq = jnp.mean(x * x, axis=-1, keepdims=True)       # (tm, 1)
    var = jnp.maximum(mean_sq - mean * mean, 0.0)
    xn = (x - mean) * jax.lax.rsqrt(var + LN_EPS)            # (tm, D)

    # Projection on the MXU (gamma/beta folded into w/b); f32 accumulation.
    out = jnp.dot(xn.astype(w_ref.dtype), w_ref[...],
                  preferred_element_type=jnp.float32)        # (tm, O_pad)
    o_ref[...] = (out + b_ref[...]).astype(o_ref.dtype)


def cls_layer_text_video(lang_feat, img_feat, audio_feat, gamma, beta, weight, bias,
                         *, tm=None, matmul_dtype=jnp.bfloat16,
                         out_dtype=jnp.float32):
    """lang_feat, img_feat: [B, S, D]; weight: [O, D] (PyTorch layout); bias: [O].

    matmul_dtype: dtype of the matmul operands (bf16 default; accumulation is
    always f32).  Pass jnp.float32 for an exact-precision path.
    out_dtype: dtype of the kernel's output store (bf16 halves output bytes).
    """
    del audio_feat  # unused in the reference forward

    B, S, D = lang_feat.shape
    O = weight.shape[0]
    R = B * S

    # --- activations: keep native dtype on the wire -------------------------
    act_dtype = jnp.promote_types(lang_feat.dtype, img_feat.dtype)
    lang2d = lang_feat.reshape(R, D).astype(act_dtype)   # no-op when dtypes match
    img2d = img_feat.reshape(R, D).astype(act_dtype)
    act_item = jnp.dtype(act_dtype).itemsize
    out_item = jnp.dtype(out_dtype).itemsize
    w_item = jnp.dtype(matmul_dtype).itemsize

    # Sublane packing: f32 -> 8-row multiple, bf16 -> 16, int8/fp8 -> 32.
    row_mult = max(8, 32 // max(act_item, 1))

    # Lane-dense output: pad O up to a multiple of 128 (avoids masked vst).
    O_pad = max(128, _round_up(O, 128))

    # --- VMEM ceiling derived from the chip (25% headroom) ------------------
    try:
        vmem_cap = int(pltpu.get_tpu_info().vmem_capacity_bytes)
    except Exception:
        vmem_cap = 64 << 20  # assume v7x worst case if the query is unavailable
    vmem_ceiling = int(vmem_cap * 0.75)

    # Constant-index weight/bias: single-buffer when big enough to matter.
    w_bytes = D * O_pad * w_item
    single_buffer_consts = bool(w_bytes >= (2 << 20)) and hasattr(pl, "Buffered")

    def _vmem_bytes(tile_rows):
        act = 2 * 2 * tile_rows * D * act_item                 # lang+img, 2 bufs each
        out = 2 * tile_rows * O_pad * out_item                 # output, 2 bufs
        wgt = (1 if single_buffer_consts else 2) * w_bytes     # resident weight
        bia = 2 * O_pad * 4                                    # bias
        tmp = 3 * tile_rows * D * 4 + tile_rows * O_pad * 4    # in-kernel f32 temps
        return act + out + wgt + bia + tmp

    # --- row tile selection --------------------------------------------------
    if tm is None:
        tm = 512  # large tile amortizes per-step DMA/setup overhead (v5e/v6e)
    tm = max(row_mult, min(_round_up(tm, row_mult), _round_up(R, row_mult)))
    # Keep a >=2-step grid when R allows it, so the "parallel" row axis can be
    # sharded across v7x's two TensorCores (no effect on single-TC v5e/v6e).
    if R > 2 * row_mult:
        tm = min(tm, _round_up(pl.cdiv(R, 2), row_mult))
    # Shrink until the working set fits under the chip-derived VMEM ceiling.
    while tm > row_mult and _vmem_bytes(tm) > vmem_ceiling:
        tm = max(row_mult, _round_up(tm // 2, row_mult))

    R_pad = _round_up(R, tm)
    if R_pad != R:
        pad = ((0, R_pad - R), (0, 0))
        lang2d = jnp.pad(lang2d, pad)
        img2d = jnp.pad(img2d, pad)

    # --- fold gamma/beta into the projection (wrapper-side precompute) ------
    w_t = gamma.astype(jnp.float32)[:, None] * weight.T.astype(jnp.float32)  # (D, O)
    b_fold = (beta.astype(jnp.float32) @ weight.T.astype(jnp.float32)
              + bias.astype(jnp.float32))                                    # (O,)
    if O_pad != O:
        w_t = jnp.pad(w_t, ((0, 0), (0, O_pad - O)))
        b_fold = jnp.pad(b_fold, ((0, O_pad - O),))
    w_t = w_t.astype(matmul_dtype)
    b2d = b_fold.reshape(1, O_pad).astype(jnp.float32)

    # --- specs ---------------------------------------------------------------
    w_spec = pl.BlockSpec((D, O_pad), lambda i: (0, 0))
    b_spec = pl.BlockSpec((1, O_pad), lambda i: (0, 0))
    if single_buffer_consts:
        try:
            w_spec = pl.BlockSpec((D, O_pad), lambda i: (0, 0),
                                  pipeline_mode=pl.Buffered(1))
            b_spec = pl.BlockSpec((1, O_pad), lambda i: (0, 0),
                                  pipeline_mode=pl.Buffered(1))
        except TypeError:
            single_buffer_consts = False  # older API; keep default buffering

    cost = pl.CostEstimate(
        flops=2 * R_pad * D * O_pad,
        transcendentals=0,
        bytes_accessed=(2 * R_pad * D * act_item
                        + R_pad * O_pad * out_item
                        + D * O_pad * w_item
                        + O_pad * 4),
    )

    vmem_limit = int(min(max(int(1.25 * _vmem_bytes(tm)) + (4 << 20), 16 << 20),
                         vmem_ceiling))

    out2d = pl.pallas_call(
        _cls_kernel,
        out_shape=jax.ShapeDtypeStruct((R_pad, O_pad), out_dtype),
        grid_spec=pltpu.PrefetchScalarGridSpec(
            num_scalar_prefetch=0,
            grid=(R_pad // tm,),
            in_specs=[
                pl.BlockSpec((tm, D), lambda i: (i, 0)),   # lang rows tile (native dtype)
                pl.BlockSpec((tm, D), lambda i: (i, 0)),   # img rows tile (native dtype)
                w_spec,                                    # folded weight (resident)
                b_spec,                                    # folded bias (resident)
            ],
            out_specs=pl.BlockSpec((tm, O_pad), lambda i: (i, 0)),
        ),
        compiler_params=pltpu.CompilerParams(
            dimension_semantics=("parallel",),
            vmem_limit_bytes=vmem_limit),
        cost_estimate=cost,
    )(lang2d, img2d, w_t, b2d)

    if R_pad != R or O_pad != O:
        out2d = out2d[:R, :O]
    return out2d.reshape(B, S, O)


def _reference(lang_feat, img_feat, gamma, beta, weight, bias):
    x = (lang_feat + img_feat).astype(jnp.float32)
    mean = jnp.mean(x, axis=-1, keepdims=True)
    var = jnp.mean((x - mean) ** 2, axis=-1, keepdims=True)
    xn = (x - mean) / jnp.sqrt(var + LN_EPS)
    y = xn * gamma + beta
    return y @ weight.T + bias


if __name__ == "__main__":
    B, S, D, O = 2, 8, 32, 16  # batch, seq, input_dim, output_dim

    key = jax.random.PRNGKey(0)
    k1, k2, k3, k4, k5 = jax.random.split(key, 5)

    lang_feat = jax.random.normal(k1, (B, S, D), dtype=jnp.float32)
    img_feat = jax.random.normal(k2, (B, S, D), dtype=jnp.float32)
    audio_feat = jax.random.normal(k3, (B, S, D), dtype=jnp.float32)  # unused

    # Deterministic synthetic parameters (not a checkpoint load).
    gamma = jnp.ones((D,), dtype=jnp.float32)
    beta = jnp.zeros((D,), dtype=jnp.float32)
    weight = jax.random.normal(k4, (O, D), dtype=jnp.float32) * 0.05  # PyTorch [out, in]
    bias = jax.random.normal(k5, (O,), dtype=jnp.float32) * 0.01

    ref = _reference(lang_feat, img_feat, gamma, beta, weight, bias)

    # Exact-precision path (f32 matmul operands) vs reference.
    out_f32 = cls_layer_text_video(lang_feat, img_feat, audio_feat,
                                   gamma, beta, weight, bias,
                                   matmul_dtype=jnp.float32)
    jax.block_until_ready(out_f32)
    assert out_f32.shape == (B, S, O)
    assert jnp.allclose(out_f32, ref, atol=1e-4, rtol=1e-4), "f32 mismatch vs reference"

    # Default fast path: bf16 matmul operands, f32 accumulation / LN.
    out_fast = cls_layer_text_video(lang_feat, img_feat, audio_feat,
                                    gamma, beta, weight, bias)
    jax.block_until_ready(out_fast)
    assert out_fast.shape == (B, S, O)
    assert jnp.allclose(out_fast, ref, atol=2e-2, rtol=2e-2), "bf16-matmul mismatch"

    # Recommended production path: bf16 activations stay bf16 on the wire.
    out_bf16 = cls_layer_text_video(lang_feat.astype(jnp.bfloat16),
                                    img_feat.astype(jnp.bfloat16),
                                    audio_feat,
                                    gamma, beta, weight, bias)
    jax.block_until_ready(out_bf16)
    assert out_bf16.shape == (B, S, O)
    assert jnp.allclose(out_bf16, ref, atol=5e-2, rtol=5e-2), "bf16-activation mismatch"

    print("KERNEL_OK")
</pallas_src>

<mosaic_0001>
module attributes {stable_mosaic.version = 11 : i64} {
  func.func @_cls_kernel(%arg0: i32, %arg1: memref<16x32xf32, #tpu.memory_space<vmem>>, %arg2: memref<16x32xf32, #tpu.memory_space<vmem>>, %arg3: memref<32x128xf32, #tpu.memory_space<vmem>>, %arg4: memref<1x128xf32, #tpu.memory_space<vmem>>, %arg5: memref<16x128xf32, #tpu.memory_space<vmem>>) attributes {dimension_semantics = [#tpu.dimension_semantics<parallel>], iteration_bounds = array<i64: 1>, scalar_prefetch = 0 : i64, scratch_operands = 0 : i64, tpu.core_type = #tpu.core_type<tc>, window_params = [{transform_indices = @transform_0, window_bounds = array<i64: 16, 32>}, {transform_indices = @transform_1, window_bounds = array<i64: 16, 32>}, {pipeline_mode = #tpu.pipeline_mode<synchronous>, transform_indices = @transform_2, window_bounds = array<i64: 32, 128>}, {pipeline_mode = #tpu.pipeline_mode<synchronous>, transform_indices = @transform_3, window_bounds = array<i64: 1, 128>}, {transform_indices = @transform_4, window_bounds = array<i64: 16, 128>}]} {
    %c0 = arith.constant 0 : index
    %c0_0 = arith.constant 0 : index
    %0 = vector.load %arg1[%c0, %c0_0] : memref<16x32xf32, #tpu.memory_space<vmem>>, vector<16x32xf32>
    %c0_1 = arith.constant 0 : index
    %c0_2 = arith.constant 0 : index
    %1 = vector.load %arg2[%c0_1, %c0_2] : memref<16x32xf32, #tpu.memory_space<vmem>>, vector<16x32xf32>
    %2 = arith.addf %0, %1 : vector<16x32xf32>
    %cst = arith.constant dense<0.000000e+00> : vector<16xf32>
    %3 = vector.multi_reduction <add>, %2, %cst [1] : vector<16x32xf32> to vector<16xf32>
    %4 = vector.shape_cast %3 : vector<16xf32> to vector<16x1xf32>
    %cst_3 = arith.constant 3.200000e+01 : f32
    %5 = vector.broadcast %cst_3 : f32 to vector<16x1xf32>
    %6 = arith.divf %4, %5 : vector<16x1xf32>
    %7 = arith.mulf %2, %2 : vector<16x32xf32>
    %cst_4 = arith.constant dense<0.000000e+00> : vector<16xf32>
    %8 = vector.multi_reduction <add>, %7, %cst_4 [1] : vector<16x32xf32> to vector<16xf32>
    %9 = vector.shape_cast %8 : vector<16xf32> to vector<16x1xf32>
    %cst_5 = arith.constant 3.200000e+01 : f32
    %10 = vector.broadcast %cst_5 : f32 to vector<16x1xf32>
    %11 = arith.divf %9, %10 : vector<16x1xf32>
    %12 = arith.mulf %6, %6 : vector<16x1xf32>
    %13 = arith.subf %11, %12 : vector<16x1xf32>
    %cst_6 = arith.constant 0.000000e+00 : f32
    %14 = vector.broadcast %cst_6 : f32 to vector<16x1xf32>
    %15 = arith.maximumf %13, %14 : vector<16x1xf32>
    %16 = vector.broadcast %6 : vector<16x1xf32> to vector<16x32xf32>
    %17 = arith.subf %2, %16 : vector<16x32xf32>
    %cst_7 = arith.constant 9.99999997E-7 : f32
    %18 = vector.broadcast %cst_7 : f32 to vector<16x1xf32>
    %19 = arith.addf %15, %18 : vector<16x1xf32>
    %20 = math.rsqrt %19 : vector<16x1xf32>
    %21 = vector.broadcast %20 : vector<16x1xf32> to vector<16x32xf32>
    %22 = arith.mulf %17, %21 : vector<16x32xf32>
    %c0_8 = arith.constant 0 : index
    %c0_9 = arith.constant 0 : index
    %23 = vector.load %arg3[%c0_8, %c0_9] : memref<32x128xf32, #tpu.memory_space<vmem>>, vector<32x128xf32>
    %cst_10 = arith.constant dense<0.000000e+00> : vector<16x128xf32>
    %24 = tpu.matmul %22, %23, %cst_10 {dimension_numbers = #tpu.dot_dimension_numbers<[1], [0], [0], [1], [0, 0, 1, 1], [], []>} : vector<16x32xf32>, vector<32x128xf32>, vector<16x128xf32> -> vector<16x128xf32>
    %c0_11 = arith.constant 0 : index
    %c0_12 = arith.constant 0 : index
    %25 = vector.load %arg4[%c0_11, %c0_12] : memref<1x128xf32, #tpu.memory_space<vmem>>, vector<1x128xf32>
    %26 = vector.broadcast %25 : vector<1x128xf32> to vector<16x128xf32>
    %27 = arith.addf %24, %26 : vector<16x128xf32>
    %c0_13 = arith.constant 0 : index
    %c0_14 = arith.constant 0 : index
    %28 = vector.load %arg5[%c0_13, %c0_14] : memref<16x128xf32, #tpu.memory_space<vmem>>, vector<16x128xf32>
    tpu.vector_store %arg5[%c0_13, %c0_14], %27 {strides = array<i32>} : memref<16x128xf32, #tpu.memory_space<vmem>>, vector<16x128xf32>,
    return
  }
  func.func @transform_0(%arg0: i32) -> (i32, i32) {
    %c0_i32 = arith.constant 0 : i32
    %c0_i32_0 = arith.constant 0 : i32
    return %arg0, %c0_i32 : i32, i32
  }
  func.func @transform_1(%arg0: i32) -> (i32, i32) {
    %c0_i32 = arith.constant 0 : i32
    %c0_i32_0 = arith.constant 0 : i32
    return %arg0, %c0_i32 : i32, i32
  }
  func.func @transform_2(%arg0: i32) -> (i32, i32) {
    %c0_i32 = arith.constant 0 : i32
    %c0_i32_0 = arith.constant 0 : i32
    %c0_i32_1 = arith.constant 0 : i32
    return %c0_i32, %c0_i32_0 : i32, i32
  }
  func.func @transform_3(%arg0: i32) -> (i32, i32) {
    %c0_i32 = arith.constant 0 : i32
    %c0_i32_0 = arith.constant 0 : i32
    %c0_i32_1 = arith.constant 0 : i32
    return %c0_i32, %c0_i32_0 : i32, i32
  }
  func.func @transform_4(%arg0: i32) -> (i32, i32) {
    %c0_i32 = arith.constant 0 : i32
    %c0_i32_0 = arith.constant 0 : i32
    return %arg0, %c0_i32 : i32, i32
  }
}

</mosaic_0001>

<bundles_post_ra>
// kernel: tpu_custom_call.1
= control target key start
LH: loop header
LB: loop body
LE: loop exit
PB: predicated region body
PF: predicated region fallthrough
CT: control target
= control target key end

     0   :  { %9 = vsyncpa [#allocation3], 0  ;;  %s387_s0 = inlined_call_operand.hbm [shape: f32[16,32], index: 0, kind: input, shape index: {}]   ;;  %s388_s1 = inlined_call_operand.hbm [shape: f32[16,32], index: 1, kind: input, shape index: {}]   ;;  %s389_s2 = inlined_call_operand.hbm [shape: f32[32,128], index: 2, kind: input, shape index: {}]   ;;  %s390_s3 = inlined_call_operand.vmem [shape: f32[1,128], index: 3, kind: input, shape index: {}]   ;;  %s391_s4 = inlined_call_operand.hbm [shape: f32[16,128], index: 4, kind: output, shape index: {}]  }
   0x1   :  { %10 = vsyncpa [#allocation6], 0 }
   0x2   :  { %11 = vsyncpa [#allocation4], 0  ;;  %s29_s17 = sshll.u32 %s388_s1, 4  ;;  %s310_s18 = smov [#allocation5]   ;;  %s30_s17 = int_to_ptr.hbm [resolvable:$true] %s29_s17 }
   0x3   :  { %s31_s19 = sshll.u32 %s310_s18, 4  ;;  %s16_s22 = sshll.u32 %s387_s0, 4  ;;  %s32_s19 = int_to_ptr.vmem [resolvable:$true] %s31_s19  ;;  %s17_s22 = int_to_ptr.hbm [resolvable:$true] %s16_s22 }
   0x4   :  { %s311_s23 = smov 128   ;;  %s312_s24 = smov 8  }
   0x5   :  { %37 = dma.hbm_to_vmem [thread:$0]  %s30_s17, 256, %s32_s19, [#allocation6], %s311_s23, %s311_s23, %s312_s24  }
   0x6   :  { %s313_s25 = smov [#allocation2]   ;;  %s42_s1 = sshll.u32 %s389_s2, 4  ;;  %s43_s1 = int_to_ptr.hbm [resolvable:$true] %s42_s1 }
   0x7   :  { %s18_s26 = sshll.u32 %s313_s25, 4  ;;  %s314_s0 = smov [#allocation7]   ;;  %s19_s26 = int_to_ptr.vmem [resolvable:$true] %s18_s26 }
   0x8   :  { %24 = dma.hbm_to_vmem [thread:$0]  %s17_s22, 256, %s19_s26, [#allocation3], %s311_s23, %s311_s23, %s312_s24  }
   0x9   :  { %s44_s29 = sshll.u32 %s314_s0, 4  ;;  %s45_s29 = int_to_ptr.vmem [resolvable:$true] %s44_s29 }
   0xa   :  { %50 = dma.hbm_to_vmem [thread:$0]  %s43_s1, 512, %s45_s29, [#allocation6], %s311_s23, %s311_s23, %s312_s24  }
   0xb   :  { %304 = dma.done.wait [#allocation3], 256  }
   0xc   :  { %305 = vsyncadd [#allocation3], 4294967040 }
   0xd   :  { %306 = dma.done.wait [#allocation6], 768  }
   0xe   :  { %307 = vsyncadd [#allocation6], 4294966528  ;;  %v65_v0 = vld [vmem:[#allocation2] sm:$0xff]  ;;  %v67_v1 = vld [vmem:[#allocation5] sm:$0xff]  ;;  %vm71_vm0 = vcmask 261120   ;;  %v315_v12 = vmov 32.0  }
   0xf   :  { %v66_v2 = vld [vmem:[#allocation2 + $0x8] sm:$0xff]  ;;  %v360_v3 = vadd.f32 %v67_v1, %v65_v0  ;;  %v68_v4 = vld [vmem:[#allocation5 + $0x8] sm:$0xff]  ;;  %202 = vrcp.f32 %v315_v12  ;;  %v131_v19 = vld [vmem:[#allocation7 + $0x10] sm:$0xff]  ;;  %s316_s5 = smov [#allocation8]   ;;  %s174_s9 = sshll.u32 %s391_s4, 4  ;;  %s175_s9 = int_to_ptr.hbm [resolvable:$true] %s174_s9 }
  0x10   :  { %v366_v7 = vadd.f32 %v68_v4, %v66_v2  ;;  %v132_v17 = vld [vmem:[#allocation7 + $0x18] sm:$0xff]  ;;  %v130_v20 = vld [vmem:[#allocation7 + $0x8] sm:$0xff]  ;;  %v129_v22 = vld [vmem:[#allocation7] sm:$0xff]  ;;  %s172_s6 = sshll.u32 %s316_s5, 4  ;;  %s173_s6 = int_to_ptr.vmem [resolvable:$true] %s172_s6 }
  0x11   :  { %v72_v5 = vsel %vm71_vm0, %v360_v3, 0.0  ;;  %v87_v6 = vmul.f32 %v360_v3, %v360_v3  ;;  %155 = vmatpush.msra.mxu0 %v132_v17  ;;  %190 = vmatpush.msra.mxu1 %v132_v17  ;;  %v201_v57 = vld [vmem:[%s390_s3] ss:$0 sm:$0xff] }
  0x12   :  { %73 = vadd.xlane.f32.xlu0 %v72_v5  ;;  %v88_v9 = vmul.f32 %v366_v7, %v366_v7  ;;  %v75_v10 = vsel %vm71_vm0, %v366_v7, 0.0 }
  0x13   :  { %v89_v8 = vsel %vm71_vm0, %v87_v6, 0.0  ;;  %156 = vmatpush.msra.mxu0 %v131_v19  ;;  %191 = vmatpush.msra.mxu1 %v131_v19 }
  0x14   :  { %90 = vadd.xlane.f32.xlu1 %v89_v8  ;;  %v92_v11 = vsel %vm71_vm0, %v88_v9, 0.0 }
  0x15   :  { %v203_v13 = vpop.eup %202  ;;  %157 = vmatpush.msra.mxu0 %v130_v20  ;;  %192 = vmatpush.msra.mxu1 %v130_v20 }
  0x16   :  { %v79_v14 = vmul.f32 32.0, %v203_v13  ;;  %vm83_vm1 = vweird.f32 %v203_v13 }
  0x17   :  { %158 = vmatpush.msra.mxu0 %v129_v22  ;;  %193 = vmatpush.msra.mxu1 %v129_v22 }
  0x18   :  { %v80_v15 = vsub.f32 1.0, %v79_v14 }
  0x1a   :  { %76 = vadd.xlane.f32.xlu0 %v75_v10  ;;  %v81_v16 = vmul.f32 %v203_v13, %v80_v15 }
  0x1c   :  { %93 = vadd.xlane.f32.xlu1 %v92_v11  ;;  %v82_v18 = vadd.f32 %v203_v13, %v81_v16 }
  0x1e   :  { %v84_v21 = vsel %vm83_vm1, %v203_v13, %v82_v18 }
  0x85   :  { %v74_v23 = vpop.xlane.xlu0 %73 }
  0x86   :  { %v85_v24 = vmul.f32 %v84_v21, %v74_v23 }
  0x87   :  { %v91_v25 = vpop.xlane.xlu1 %90 }
  0x88   :  { %v97_v26 = vmul.f32 %v85_v24, %v85_v24  ;;  %v95_v27 = vmul.f32 %v91_v25, %v84_v21  ;;  %v103_v46 = vsub.f32 %v360_v3, %v85_v24 }
  0x8a   :  { %v99_v28 = vsub.f32 %v95_v27, %v97_v26 }
  0x8c   :  { %v101_v29 = vmax.f32 %v99_v28, 0.0 }
  0x8d   :  { %v77_v30 = vpop.xlane.xlu0 %76 }
  0x8e   :  { %v105_v31 = vadd.f32 1e-06, %v101_v29  ;;  %v86_v32 = vmul.f32 %v84_v21, %v77_v30 }
  0x8f   :  { %v94_v33 = vpop.xlane.xlu1 %93 }
  0x90   :  { %204 = vrsqrt.f32 %v105_v31  ;;  %v98_v34 = vmul.f32 %v86_v32, %v86_v32  ;;  %v96_v35 = vmul.f32 %v94_v33, %v84_v21  ;;  %vm113_vm3 = vweird.f32 %v105_v31 }
  0x91   :  { %v104_v54 = vsub.f32 %v366_v7, %v86_v32 }
  0x92   :  { %v100_v36 = vsub.f32 %v96_v35, %v98_v34 }
  0x94   :  { %v102_v37 = vmax.f32 %v100_v36, 0.0 }
  0x96   :  { %v205_v38 = vpop.eup %204  ;;  %v106_v40 = vadd.f32 1e-06, %v102_v37 }
  0x97   :  { %v108_v39 = vmul.f32 %v205_v38, %v105_v31  ;;  %vm114_vm2 = vweird.f32 %v205_v38 }
  0x98   :  { %206 = vrsqrt.f32 %v106_v40  ;;  %vm115_vm4 = vmor %vm113_vm3, %vm114_vm2  ;;  %vm123_vm6 = vweird.f32 %v106_v40 }
  0x99   :  { %v109_v41 = vmul.f32 %v205_v38, %v108_v39 }
  0x9b   :  { %v110_v42 = vmul.f32 0.5, %v109_v41 }
  0x9d   :  { %v111_v43 = vsub.f32 1.5, %v110_v42 }
  0x9e   :  { %v207_v44 = vpop.eup %206 }
  0x9f   :  { %v112_v45 = vmul.f32 %v205_v38, %v111_v43  ;;  %v118_v47 = vmul.f32 %v207_v44, %v106_v40  ;;  %vm124_vm5 = vweird.f32 %v207_v44 }
  0xa0   :  { %vm125_vm7 = vmor %vm123_vm6, %vm124_vm5 }
  0xa1   :  { %v116_v48 = vsel %vm115_vm4, %v205_v38, %v112_v45  ;;  %v119_v49 = vmul.f32 %v207_v44, %v118_v47 }
  0xa2   :  { %v127_v50 = vmul.f32 %v116_v48, %v103_v46 }
  0xa3   :  { %v120_v51 = vmul.f32 0.5, %v119_v49 }
  0xa4   :  { %188 = vmatmul.msk.f32.vlgmr.msra.gmra.mxu0 %vm71_vm0, %v127_v50 }
  0xa5   :  { %v121_v52 = vsub.f32 1.5, %v120_v51 }
  0xa7   :  { %v122_v53 = vmul.f32 %v207_v44, %v121_v52 }
  0xa9   :  { %v126_v55 = vsel %vm125_vm7, %v207_v44, %v122_v53 }
  0xaa   :  { %v128_v56 = vmul.f32 %v126_v55, %v104_v54 }
  0xac   :  { %189 = vmatmul.msk.f32.vlgmr.msra.gmra.mxu1 %vm71_vm0, %v128_v56 }
 0x121   :  { %v160_v58 = vpop.f32.mrf.mxu0 }
 0x122   :  { %v161_v59 = vadd.f32 %v201_v57, %v160_v58 }
 0x124   :  { %166 = vst [vmem:[#allocation8] sm:$0xff] %v161_v59 }
 0x129   :  { %v163_v60 = vpop.f32.mrf.mxu1 }
 0x12a   :  { %v164_v61 = vadd.f32 %v201_v57, %v163_v60 }
 0x12c   :  { %167 = vst [vmem:[#allocation8 + $0x8] sm:$0xff] %v164_v61 }
 0x12d   :  { %180 = dma.vmem_to_hbm [thread:$0]  %s173_s6, 256, %s175_s9, [#allocation4], %s311_s23, %s311_s23, %s312_s24  }
 0x12e   :  { %308 = dma.done.wait [#allocation4], 256  }
 0x12f   :  { %309 = vsyncadd [#allocation4], 4294967040 }
 0x130   :  { %185 = vsyncpa [#allocation3], 1 }
 0x131   :  { %186 = vsyncpa [#allocation6], 1 }
 0x132   :  { %187 = vsyncpa [#allocation4], 1 }

</bundles_post_ra>
